<compile_context>
chip_gen: v7x
topology: tpu7x:2x2x1
jax: 0.10.0
libtpu: 0.0.40
codegen_flags: <defaults>
</compile_context>

<pallas_src>
import math

import jax
import jax.numpy as jnp
from jax.experimental import pallas as pl
from jax.experimental.pallas import tpu as pltpu


def _round_up(a, m):
    return -(-a // m) * m


def _make_kernel(K, Wp, Cin, Cout, tile_h):
    Lb = tile_h * Wp

    def kernel(x_ref, w_ref, shift_ref, o_ref):
        # x_ref:     (1, 1, Cin, Lwin)   flattened padded-input window (with halo)
        # w_ref:     (K*K, Cout, Cin)    BN-scale-folded weights, one slab per tap
        # shift_ref: (Cout, 1)           fused BN shift (f32)
        # o_ref:     (1, Cout, Lb)       NCHW-flat output tile (lane-dense minor dim)
        acc = None
        for kh in range(K):
            for kw in range(K):
                off = kh * Wp + kw                           # static lane offset
                xs = x_ref[0, 0, :, pl.ds(off, Lb)]          # (Cin, Lb)
                part = jnp.dot(w_ref[kh * K + kw], xs,
                               preferred_element_type=jnp.float32)
                acc = part if acc is None else acc + part
        y = jnp.maximum(acc + shift_ref[...], 0.0)           # BN shift + ReLU epilogue
        o_ref[0] = y.astype(o_ref.dtype)

    return kernel


def sim_conv_forward(x_nchw, weight, gamma, beta, running_mean, running_var,
                     *, stride=1, eps=1e-5, target_lanes=2048):
    N, Cin, H, W = x_nchw.shape
    Cout, Cin_w, K, _ = weight.shape
    assert Cin_w == Cin  # TODO(synk): grouped conv (groups > 1) not implemented.
    pad = K // 2
    Hp, Wp = H + 2 * pad, W + 2 * pad
    Hd, Wd = Hp - K + 1, Wp - K + 1                       # dense (stride-1) out size

    # ---- fold BatchNorm (inference / running stats) into the conv weights ----
    # TODO(synk): train-mode batch statistics would need a cross-tile reduction pass.
    scale = (gamma.astype(jnp.float32)
             / jnp.sqrt(running_var.astype(jnp.float32) + eps))
    shift = beta.astype(jnp.float32) - running_mean.astype(jnp.float32) * scale
    w_folded = weight.astype(jnp.float32) * scale[:, None, None, None]
    # (Cout, Cin, K, K) -> (K*K, Cout, Cin): one (Cout, Cin) matmul slab per tap.
    w_taps = jnp.transpose(w_folded, (2, 3, 0, 1)).reshape(K * K, Cout, Cin)
    w_taps = w_taps.astype(x_nchw.dtype)                  # MXU operand dtype = input dtype
    shift2 = shift.reshape(Cout, 1)

    # ---- row tiling of the dense output ----
    # The output block's minor (lane) dim is tile_h*Wp; keep it a multiple of 128
    # unless a single tile already covers the whole padded height.
    g = 128 // math.gcd(Wp, 128)
    rows_target = max(1, target_lanes // Wp)
    if Hd <= max(g, rows_target):
        tile_h, n_rt = Hd, 1
    else:
        tile_h = max(g, (rows_target // g) * g)
        n_rt = -(-Hd // tile_h)
    Hd_pad = tile_h * n_rt
    Lb = tile_h * Wp

    # ---- flattened, padded input windows (halo rows duplicated per row tile) ----
    Lwin = _round_up((tile_h + K - 1) * Wp + (K - 1), 128)
    total = (n_rt - 1) * tile_h * Wp + Lwin
    xp = jnp.pad(x_nchw, ((0, 0), (0, 0), (pad, pad), (pad, pad)))
    xflat = xp.reshape(N, Cin, Hp * Wp)                   # NCHW -> flat: no transpose
    xflat = jnp.pad(xflat, ((0, 0), (0, 0), (0, max(0, total - Hp * Wp))))
    if n_rt == 1:
        x_win = xflat[:, None, :, :]                      # (N, 1, Cin, Lwin)
    else:
        x_win = jnp.stack(
            [xflat[:, :, i * tile_h * Wp: i * tile_h * Wp + Lwin]
             for i in range(n_rt)], axis=1)               # (N, n_rt, Cin, Lwin)

    # ---- VMEM budget: double-buffered tiles + headroom, capped for v7x (64 MiB) ----
    itemsize = jnp.dtype(x_nchw.dtype).itemsize
    x_tile_b = _round_up(Cin, 8) * Lwin * itemsize
    w_tile_b = K * K * _round_up(Cout, 8) * _round_up(Cin, 128) * itemsize
    s_tile_b = _round_up(Cout, 8) * 128 * 4
    o_tile_b = _round_up(Cout, 8) * _round_up(Lb, 128) * itemsize
    est_bytes = 2 * (x_tile_b + w_tile_b + s_tile_b + o_tile_b)
    vmem_limit = int(min(64 * 1024 * 1024, max(32 * 1024 * 1024, 4 * est_bytes)))

    kernel = _make_kernel(K, Wp, Cin, Cout, tile_h)
    out_wide = pl.pallas_call(
        kernel,
        out_shape=jax.ShapeDtypeStruct((N, Cout, Hd_pad * Wp), x_nchw.dtype),
        grid_spec=pltpu.PrefetchScalarGridSpec(
            num_scalar_prefetch=0,
            grid=(N, n_rt),
            in_specs=[
                pl.BlockSpec((1, 1, Cin, Lwin), lambda n, i: (n, i, 0, 0)),
                pl.BlockSpec((K * K, Cout, Cin), lambda n, i: (0, 0, 0)),
                pl.BlockSpec((Cout, 1), lambda n, i: (0, 0)),
            ],
            out_specs=pl.BlockSpec((1, Cout, Lb), lambda n, i: (n, 0, i)),
        ),
        compiler_params=pltpu.CompilerParams(
            dimension_semantics=("parallel", "parallel"),
            vmem_limit_bytes=vmem_limit),
    )(x_win, w_taps, shift2)

    # Result is already NCHW-flat: reshape + crop the padding columns / extra rows.
    out = out_wide.reshape(N, Cout, Hd_pad, Wp)[:, :, :Hd, :Wd]
    if stride > 1:
        # TODO(synk): stride > 1 is computed at dense resolution and subsampled;
        # a strided gather inside the kernel would avoid the wasted compute.
        out = out[:, :, ::stride, ::stride]
    return out


if __name__ == "__main__":
    key = jax.random.PRNGKey(0)
    k1, k2, k3, k4, k5, k6 = jax.random.split(key, 6)

    # SimConv(in_channels=4, out_channels=8, kernel_size=3, stride=1)
    N, Cin, H, W = 2, 4, 16, 16
    Cout, K, stride = 8, 3, 1
    pad = K // 2

    x = jax.random.normal(k1, (N, Cin, H, W), jnp.float32)
    weight = jax.random.normal(k2, (Cout, Cin, K, K), jnp.float32) * 0.1
    gamma = jax.random.uniform(k3, (Cout,), jnp.float32, minval=0.5, maxval=1.5)
    beta = jax.random.normal(k4, (Cout,), jnp.float32) * 0.1
    running_mean = jax.random.normal(k5, (Cout,), jnp.float32) * 0.1
    running_var = jax.random.uniform(k6, (Cout,), jnp.float32, minval=0.5, maxval=1.5)

    out = sim_conv_forward(x, weight, gamma, beta, running_mean, running_var,
                           stride=stride)
    out = jax.block_until_ready(out)

    # pure-JAX reference (Conv2d -> BN(eval) -> ReLU)
    ref_conv = jax.lax.conv_general_dilated(
        x, weight, window_strides=(stride, stride),
        padding=[(pad, pad), (pad, pad)],
        dimension_numbers=('NCHW', 'OIHW', 'NCHW'))
    scale = gamma / jnp.sqrt(running_var + 1e-5)
    shift = beta - running_mean * scale
    ref = jnp.maximum(scale.reshape(1, -1, 1, 1) * ref_conv
                      + shift.reshape(1, -1, 1, 1), 0.0)

    assert out.shape == (N, Cout, H // stride, W // stride)
    assert jnp.allclose(out, ref, atol=1e-4, rtol=1e-4), "mismatch vs reference"
    print("KERNEL_OK")
</pallas_src>

<mosaic_0001>
module attributes {stable_mosaic.version = 11 : i64} {
  func.func @kernel(%arg0: i32, %arg1: i32, %arg2: memref<1x1x4x384xf32, #tpu.memory_space<vmem>>, %arg3: memref<9x8x4xf32, #tpu.memory_space<vmem>>, %arg4: memref<8x1xf32, #tpu.memory_space<vmem>>, %arg5: memref<1x8x288xf32, #tpu.memory_space<vmem>>) attributes {dimension_semantics = [#tpu.dimension_semantics<parallel>, #tpu.dimension_semantics<parallel>], iteration_bounds = array<i64: 2, 1>, scalar_prefetch = 0 : i64, scratch_operands = 0 : i64, tpu.core_type = #tpu.core_type<tc>, window_params = [{transform_indices = @transform_0, window_bounds = array<i64: 1, 1, 4, 384>}, {pipeline_mode = #tpu.pipeline_mode<synchronous>, transform_indices = @transform_1, window_bounds = array<i64: 9, 8, 4>}, {pipeline_mode = #tpu.pipeline_mode<synchronous>, transform_indices = @transform_2, window_bounds = array<i64: 8, 1>}, {transform_indices = @transform_3, window_bounds = array<i64: 1, 8, 288>}]} {
    %c0 = arith.constant 0 : index
    %c0_0 = arith.constant 0 : index
    %c0_1 = arith.constant 0 : index
    %c0_2 = arith.constant 0 : index
    %0 = vector.load %arg2[%c0, %c0_0, %c0_1, %c0_2] : memref<1x1x4x384xf32, #tpu.memory_space<vmem>>, vector<1x1x4x288xf32>
    %1 = vector.shape_cast %0 : vector<1x1x4x288xf32> to vector<4x288xf32>
    %c0_3 = arith.constant 0 : index
    %c0_4 = arith.constant 0 : index
    %c0_5 = arith.constant 0 : index
    %2 = vector.load %arg3[%c0_3, %c0_4, %c0_5] : memref<9x8x4xf32, #tpu.memory_space<vmem>>, vector<1x8x4xf32>
    %3 = vector.shape_cast %2 : vector<1x8x4xf32> to vector<8x4xf32>
    %cst = arith.constant dense<0.000000e+00> : vector<8x288xf32>
    %4 = tpu.matmul %3, %1, %cst {dimension_numbers = #tpu.dot_dimension_numbers<[1], [0], [0], [1], [0, 0, 1, 1], [], []>} : vector<8x4xf32>, vector<4x288xf32>, vector<8x288xf32> -> vector<8x288xf32>
    %c0_6 = arith.constant 0 : index
    %c0_7 = arith.constant 0 : index
    %c0_8 = arith.constant 0 : index
    %c1 = arith.constant 1 : index
    %5 = vector.load %arg2[%c0_6, %c0_7, %c0_8, %c1] : memref<1x1x4x384xf32, #tpu.memory_space<vmem>>, vector<1x1x4x288xf32>
    %6 = vector.shape_cast %5 : vector<1x1x4x288xf32> to vector<4x288xf32>
    %c1_9 = arith.constant 1 : index
    %c0_10 = arith.constant 0 : index
    %c0_11 = arith.constant 0 : index
    %7 = vector.load %arg3[%c1_9, %c0_10, %c0_11] : memref<9x8x4xf32, #tpu.memory_space<vmem>>, vector<1x8x4xf32>
    %8 = vector.shape_cast %7 : vector<1x8x4xf32> to vector<8x4xf32>
    %cst_12 = arith.constant dense<0.000000e+00> : vector<8x288xf32>
    %9 = tpu.matmul %8, %6, %cst_12 {dimension_numbers = #tpu.dot_dimension_numbers<[1], [0], [0], [1], [0, 0, 1, 1], [], []>} : vector<8x4xf32>, vector<4x288xf32>, vector<8x288xf32> -> vector<8x288xf32>
    %10 = arith.addf %4, %9 : vector<8x288xf32>
    %c0_13 = arith.constant 0 : index
    %c0_14 = arith.constant 0 : index
    %c0_15 = arith.constant 0 : index
    %c2 = arith.constant 2 : index
    %11 = vector.load %arg2[%c0_13, %c0_14, %c0_15, %c2] : memref<1x1x4x384xf32, #tpu.memory_space<vmem>>, vector<1x1x4x288xf32>
    %12 = vector.shape_cast %11 : vector<1x1x4x288xf32> to vector<4x288xf32>
    %c2_16 = arith.constant 2 : index
    %c0_17 = arith.constant 0 : index
    %c0_18 = arith.constant 0 : index
    %13 = vector.load %arg3[%c2_16, %c0_17, %c0_18] : memref<9x8x4xf32, #tpu.memory_space<vmem>>, vector<1x8x4xf32>
    %14 = vector.shape_cast %13 : vector<1x8x4xf32> to vector<8x4xf32>
    %cst_19 = arith.constant dense<0.000000e+00> : vector<8x288xf32>
    %15 = tpu.matmul %14, %12, %cst_19 {dimension_numbers = #tpu.dot_dimension_numbers<[1], [0], [0], [1], [0, 0, 1, 1], [], []>} : vector<8x4xf32>, vector<4x288xf32>, vector<8x288xf32> -> vector<8x288xf32>
    %16 = arith.addf %10, %15 : vector<8x288xf32>
    %c0_20 = arith.constant 0 : index
    %c0_21 = arith.constant 0 : index
    %c0_22 = arith.constant 0 : index
    %c18 = arith.constant 18 : index
    %17 = vector.load %arg2[%c0_20, %c0_21, %c0_22, %c18] : memref<1x1x4x384xf32, #tpu.memory_space<vmem>>, vector<1x1x4x288xf32>
    %18 = vector.shape_cast %17 : vector<1x1x4x288xf32> to vector<4x288xf32>
    %c3 = arith.constant 3 : index
    %c0_23 = arith.constant 0 : index
    %c0_24 = arith.constant 0 : index
    %19 = vector.load %arg3[%c3, %c0_23, %c0_24] : memref<9x8x4xf32, #tpu.memory_space<vmem>>, vector<1x8x4xf32>
    %20 = vector.shape_cast %19 : vector<1x8x4xf32> to vector<8x4xf32>
    %cst_25 = arith.constant dense<0.000000e+00> : vector<8x288xf32>
    %21 = tpu.matmul %20, %18, %cst_25 {dimension_numbers = #tpu.dot_dimension_numbers<[1], [0], [0], [1], [0, 0, 1, 1], [], []>} : vector<8x4xf32>, vector<4x288xf32>, vector<8x288xf32> -> vector<8x288xf32>
    %22 = arith.addf %16, %21 : vector<8x288xf32>
    %c0_26 = arith.constant 0 : index
    %c0_27 = arith.constant 0 : index
    %c0_28 = arith.constant 0 : index
    %c19 = arith.constant 19 : index
    %23 = vector.load %arg2[%c0_26, %c0_27, %c0_28, %c19] : memref<1x1x4x384xf32, #tpu.memory_space<vmem>>, vector<1x1x4x288xf32>
    %24 = vector.shape_cast %23 : vector<1x1x4x288xf32> to vector<4x288xf32>
    %c4 = arith.constant 4 : index
    %c0_29 = arith.constant 0 : index
    %c0_30 = arith.constant 0 : index
    %25 = vector.load %arg3[%c4, %c0_29, %c0_30] : memref<9x8x4xf32, #tpu.memory_space<vmem>>, vector<1x8x4xf32>
    %26 = vector.shape_cast %25 : vector<1x8x4xf32> to vector<8x4xf32>
    %cst_31 = arith.constant dense<0.000000e+00> : vector<8x288xf32>
    %27 = tpu.matmul %26, %24, %cst_31 {dimension_numbers = #tpu.dot_dimension_numbers<[1], [0], [0], [1], [0, 0, 1, 1], [], []>} : vector<8x4xf32>, vector<4x288xf32>, vector<8x288xf32> -> vector<8x288xf32>
    %28 = arith.addf %22, %27 : vector<8x288xf32>
    %c0_32 = arith.constant 0 : index
    %c0_33 = arith.constant 0 : index
    %c0_34 = arith.constant 0 : index
    %c20 = arith.constant 20 : index
    %29 = vector.load %arg2[%c0_32, %c0_33, %c0_34, %c20] : memref<1x1x4x384xf32, #tpu.memory_space<vmem>>, vector<1x1x4x288xf32>
    %30 = vector.shape_cast %29 : vector<1x1x4x288xf32> to vector<4x288xf32>
    %c5 = arith.constant 5 : index
    %c0_35 = arith.constant 0 : index
    %c0_36 = arith.constant 0 : index
    %31 = vector.load %arg3[%c5, %c0_35, %c0_36] : memref<9x8x4xf32, #tpu.memory_space<vmem>>, vector<1x8x4xf32>
    %32 = vector.shape_cast %31 : vector<1x8x4xf32> to vector<8x4xf32>
    %cst_37 = arith.constant dense<0.000000e+00> : vector<8x288xf32>
    %33 = tpu.matmul %32, %30, %cst_37 {dimension_numbers = #tpu.dot_dimension_numbers<[1], [0], [0], [1], [0, 0, 1, 1], [], []>} : vector<8x4xf32>, vector<4x288xf32>, vector<8x288xf32> -> vector<8x288xf32>
    %34 = arith.addf %28, %33 : vector<8x288xf32>
    %c0_38 = arith.constant 0 : index
    %c0_39 = arith.constant 0 : index
    %c0_40 = arith.constant 0 : index
    %c36 = arith.constant 36 : index
    %35 = vector.load %arg2[%c0_38, %c0_39, %c0_40, %c36] : memref<1x1x4x384xf32, #tpu.memory_space<vmem>>, vector<1x1x4x288xf32>
    %36 = vector.shape_cast %35 : vector<1x1x4x288xf32> to vector<4x288xf32>
    %c6 = arith.constant 6 : index
    %c0_41 = arith.constant 0 : index
    %c0_42 = arith.constant 0 : index
    %37 = vector.load %arg3[%c6, %c0_41, %c0_42] : memref<9x8x4xf32, #tpu.memory_space<vmem>>, vector<1x8x4xf32>
    %38 = vector.shape_cast %37 : vector<1x8x4xf32> to vector<8x4xf32>
    %cst_43 = arith.constant dense<0.000000e+00> : vector<8x288xf32>
    %39 = tpu.matmul %38, %36, %cst_43 {dimension_numbers = #tpu.dot_dimension_numbers<[1], [0], [0], [1], [0, 0, 1, 1], [], []>} : vector<8x4xf32>, vector<4x288xf32>, vector<8x288xf32> -> vector<8x288xf32>
    %40 = arith.addf %34, %39 : vector<8x288xf32>
    %c0_44 = arith.constant 0 : index
    %c0_45 = arith.constant 0 : index
    %c0_46 = arith.constant 0 : index
    %c37 = arith.constant 37 : index
    %41 = vector.load %arg2[%c0_44, %c0_45, %c0_46, %c37] : memref<1x1x4x384xf32, #tpu.memory_space<vmem>>, vector<1x1x4x288xf32>
    %42 = vector.shape_cast %41 : vector<1x1x4x288xf32> to vector<4x288xf32>
    %c7 = arith.constant 7 : index
    %c0_47 = arith.constant 0 : index
    %c0_48 = arith.constant 0 : index
    %43 = vector.load %arg3[%c7, %c0_47, %c0_48] : memref<9x8x4xf32, #tpu.memory_space<vmem>>, vector<1x8x4xf32>
    %44 = vector.shape_cast %43 : vector<1x8x4xf32> to vector<8x4xf32>
    %cst_49 = arith.constant dense<0.000000e+00> : vector<8x288xf32>
    %45 = tpu.matmul %44, %42, %cst_49 {dimension_numbers = #tpu.dot_dimension_numbers<[1], [0], [0], [1], [0, 0, 1, 1], [], []>} : vector<8x4xf32>, vector<4x288xf32>, vector<8x288xf32> -> vector<8x288xf32>
    %46 = arith.addf %40, %45 : vector<8x288xf32>
    %c0_50 = arith.constant 0 : index
    %c0_51 = arith.constant 0 : index
    %c0_52 = arith.constant 0 : index
    %c38 = arith.constant 38 : index
    %47 = vector.load %arg2[%c0_50, %c0_51, %c0_52, %c38] : memref<1x1x4x384xf32, #tpu.memory_space<vmem>>, vector<1x1x4x288xf32>
    %48 = vector.shape_cast %47 : vector<1x1x4x288xf32> to vector<4x288xf32>
    %c8 = arith.constant 8 : index
    %c0_53 = arith.constant 0 : index
    %c0_54 = arith.constant 0 : index
    %49 = vector.load %arg3[%c8, %c0_53, %c0_54] : memref<9x8x4xf32, #tpu.memory_space<vmem>>, vector<1x8x4xf32>
    %50 = vector.shape_cast %49 : vector<1x8x4xf32> to vector<8x4xf32>
    %cst_55 = arith.constant dense<0.000000e+00> : vector<8x288xf32>
    %51 = tpu.matmul %50, %48, %cst_55 {dimension_numbers = #tpu.dot_dimension_numbers<[1], [0], [0], [1], [0, 0, 1, 1], [], []>} : vector<8x4xf32>, vector<4x288xf32>, vector<8x288xf32> -> vector<8x288xf32>
    %52 = arith.addf %46, %51 : vector<8x288xf32>
    %c0_56 = arith.constant 0 : index
    %c0_57 = arith.constant 0 : index
    %53 = vector.load %arg4[%c0_56, %c0_57] : memref<8x1xf32, #tpu.memory_space<vmem>>, vector<8x1xf32>
    %54 = vector.broadcast %53 : vector<8x1xf32> to vector<8x288xf32>
    %55 = arith.addf %52, %54 : vector<8x288xf32>
    %cst_58 = arith.constant 0.000000e+00 : f32
    %56 = vector.broadcast %cst_58 : f32 to vector<8x288xf32>
    %57 = arith.maximumf %55, %56 : vector<8x288xf32>
    %c0_59 = arith.constant 0 : index
    %c0_60 = arith.constant 0 : index
    %c0_61 = arith.constant 0 : index
    %58 = vector.load %arg5[%c0_59, %c0_60, %c0_61] : memref<1x8x288xf32, #tpu.memory_space<vmem>>, vector<1x8x288xf32>
    %59 = vector.shape_cast %58 : vector<1x8x288xf32> to vector<8x288xf32>
    %60 = vector.shape_cast %57 : vector<8x288xf32> to vector<1x8x288xf32>
    tpu.vector_store %arg5[%c0_59, %c0_60, %c0_61], %60 {strides = array<i32>} : memref<1x8x288xf32, #tpu.memory_space<vmem>>, vector<1x8x288xf32>,
    return
  }
  func.func @transform_0(%arg0: i32, %arg1: i32) -> (i32, i32, i32, i32) {
    %c0_i32 = arith.constant 0 : i32
    %c0_i32_0 = arith.constant 0 : i32
    %c0_i32_1 = arith.constant 0 : i32
    return %arg0, %arg1, %c0_i32, %c0_i32_0 : i32, i32, i32, i32
  }
  func.func @transform_1(%arg0: i32, %arg1: i32) -> (i32, i32, i32) {
    %c0_i32 = arith.constant 0 : i32
    %c0_i32_0 = arith.constant 0 : i32
    %c0_i32_1 = arith.constant 0 : i32
    %c0_i32_2 = arith.constant 0 : i32
    return %c0_i32, %c0_i32_0, %c0_i32_1 : i32, i32, i32
  }
  func.func @transform_2(%arg0: i32, %arg1: i32) -> (i32, i32) {
    %c0_i32 = arith.constant 0 : i32
    %c0_i32_0 = arith.constant 0 : i32
    %c0_i32_1 = arith.constant 0 : i32
    return %c0_i32, %c0_i32_0 : i32, i32
  }
  func.func @transform_3(%arg0: i32, %arg1: i32) -> (i32, i32, i32) {
    %c0_i32 = arith.constant 0 : i32
    %c0_i32_0 = arith.constant 0 : i32
    return %arg0, %c0_i32, %arg1 : i32, i32, i32
  }
}

</mosaic_0001>

<bundles_post_ra>
// kernel: tpu_custom_call.1
= control target key start
LH: loop header
LB: loop body
LE: loop exit
PB: predicated region body
PF: predicated region fallthrough
CT: control target
= control target key end

     0   :  { %8 = vsyncpa [#allocation3], 0  ;;  %s2397_s0 = inlined_call_operand.vmem [shape: f32[2,1,4,384], index: 0, kind: input, shape index: {}]   ;;  %s2398_s1 = inlined_call_operand.vmem [shape: f32[9,8,4], index: 1, kind: input, shape index: {}]   ;;  %s2399_s2 = inlined_call_operand.vmem [shape: f32[8,1], index: 2, kind: input, shape index: {}]   ;;  %s2400_s3 = inlined_call_operand.hbm [shape: f32[2,8,288], index: 3, kind: output, shape index: {}]  }
   0x1   :  { %10 = vsyncpa [#allocation3 + $0x1], 0  ;;  %s2136_s12 = smov 0   ;;  %s2138_s13 = smov 0  }
   0x2   :  { %s2140_s14 = smov 0   ;;  %s2142_s15 = smov 0  }
   0x3   :  { %s2144_s16 = smov 0   ;;  %s2146_s17 = smov 0  }
   0x4 LB: > { %s1812_s18 = sadd.s32 4294967295, %s2102_s17   ;;  %s1813_s19 = sadd.s32 4294967294, %s2102_s17   ;;  %s2102_s17 = sphi %s2146_s17, %s16_s17   ;;  %s2098_s16 = sphi %s2144_s16, %s2407_s16   ;;  %s2094_s15 = sphi %s2142_s15, %s2406_s15   ;;  %s2090_s14 = sphi %s2140_s14, %s2405_s14   ;;  %s2086_s13 = sphi %s2138_s13, %s2404_s13   ;;  %s2082_s12 = sphi %s2136_s12, %s2403_s12  }
   0x5   : > { %s28_s20 = sadd.s32 1, %s2098_s16  ;;  %s107_s21 = sadd.s32 1, %s2090_s14 }
   0x6   : > { %p30_p0 = scmp.ge.s32.totalorder %s28_s20, 2  ;;  %p117_p1 = scmp.ne.s32.totalorder %s2090_s14, %s2086_s13 }
   0x7   : > { %p118_p2 = scmp.eq.s32.totalorder %s1812_s18, 1  ;;  %p123_p3 = scmp.ne.s32.totalorder %s2086_s13, %s2082_s12 }
   0x8   : > { %s2409_s20 = smov (%p30_p0, %s28_s20), 0  ;;  %p124_p5 = scmp.eq.s32.totalorder %s1813_s19, 1 }
   0x9   : > { %p2176_p4 = por %p118_p2, %p117_p1  ;;  %s102_s23 = ssub.s32 %s2098_s16, %s2409_s20 }
   0xa   : > { %p1816_p6 = scmp.ge.s32.totalorder %s2102_s17, 1  ;;  %p105_p7 = scmp.eq.s32.totalorder %s102_s23, 0 }
   0xb   : > { %p2183_p8 = por %p124_p5, %p123_p3  ;;  %p160_p9 = scmp.lt.s32.totalorder %s2102_s17, 3 }
   0xc   : > { %s2189_s25 = scalar_select %p105_p7, %s2090_s14, %s107_s21  }
   0xd   : > { %p161_p10 = pnand %p1816_p6, %p160_p9 }
   0xe   : > { %p188_p11 = scmp.lt.s32.totalorder (!%p161_p10), %s2094_s15, 1  ;;  %v2104_v0 = vmov (!%p161_p10), 0.0   ;;  %vm2105_vm0 = vmmov (!%p161_p10), 0   ;;  %s2106_s4 = smov (!%p161_p10), 127   ;;  %v1700_v11 = vld [vmem:[%s2399_s2] sm:$0xff] (!%p161_p10)  ;;  %v2114_v12 = vmov (!%p161_p10), 0  }
   0xf   : > { %164 = sbr.rel (%p161_p10) target bundleno = 447 (0x1bf), region = 32  ;;  %1892 = vmatprep.subr.mxu1 (!%p161_p10), %v2104_v0  ;;  %290 = vmatprep.mubr.f32.mxu0 (!%p161_p10), %v2104_v0  ;;  %s2107_s5 = smov (!%p161_p10), 126   ;;  %vm219_vm1 = vcmask (!%p161_p10), 1043456   ;;  %vm212_vm2 = vcmask (!%p161_p10), 1039360   ;;  %v1818_v18 = vld [vmem:[%s2398_s1 + $0x8] sm:$0xff] (!%p161_p10)  ;;  %vm215_vm3 = vcmask (!%p161_p10), 31744  }
  0x10   : > { %1894 = vmatprep.mubr.msk.f32.mxu1 (!%p161_p10), %vm2105_vm0, %v2104_v0  ;;  %s2108_s6 = smov (!%p161_p10), 110   ;;  %s2109_s7 = smov (!%p161_p10), 109   ;;  %2022 = vset.pattern.permute.xlu0 (!%p161_p10), %v2114_v12  ;;  %vm530_vm4 = vcmask (!%p161_p10), 1031168   ;;  %v200_v24 = vld [vmem:[%s2398_s1] sm:$0xff] (!%p161_p10)  ;;  %vm699_vm5 = vcmask (!%p161_p10), 900096   ;;  %v1829_v29 = vld [vmem:[%s2398_s1 + $0x10] sm:$0xff] (!%p161_p10) }
  0x11   : > { %s2110_s8 = smov (!%p161_p10), 108   ;;  %s2111_s9 = smov (!%p161_p10), 92   ;;  %v1835_v31 = vld [vmem:[%s2398_s1 + $0x18] sm:$0xff] (!%p161_p10)  ;;  %vm868_vm6 = vcmask (!%p161_p10), 891904   ;;  %v1841_v34 = vld [vmem:[%s2398_s1 + $0x20] sm:$0xff] (!%p161_p10)  ;;  %v1847_v39 = vld [vmem:[%s2398_s1 + $0x28] sm:$0xff] (!%p161_p10) }
  0x12   : > { %s2112_s10 = smov (!%p161_p10), 91   ;;  %s2113_s11 = smov (!%p161_p10), 90   ;;  %vm1037_vm7 = vcmask (!%p161_p10), 883712   ;;  %v1853_v46 = vld [vmem:[%s2398_s1 + $0x30] sm:$0xff] (!%p161_p10)  ;;  %vm1206_vm8 = vcmask (!%p161_p10), 752640   ;;  %v1859_v49 = vld [vmem:[%s2398_s1 + $0x38] sm:$0xff] (!%p161_p10) }
  0x13   : > { %v1865_v53 = vld [vmem:[%s2398_s1 + $0x40] sm:$0xff] (!%p161_p10)  ;;  %vm1375_vm9 = vcmask (!%p161_p10), 744448   ;;  %vm1544_vm10 = vcmask (!%p161_p10), 736256   ;;  %s185_s23 = sand.u32 (!%p161_p10), 1, %s2086_s13   ;;  %vm1714_vm11 = vcmask (!%p161_p10), 261120   ;;  %s1955_s28 = smul.u32 (!%p161_p10), 384, %s2094_s15 }
  0x16   : > { %s189_s26 = scalar_select %p188_p11, %s2094_s15, 1 }
  0x18   : > { %s1954_s27 = smul.u32 12, %s189_s26 }
  0x19   : > { %s1953_s26 = smul.u32 24, %s185_s23 }
  0x1a   : > { %s2198_s30 = scalar_lea.vmem %s2397_s0, %s1954_s27 }
  0x1b   : > { %v2203_v1 = vld [vmem:[%s2198_s30] sm:$0xff]  ;;  %v2209_v3 = vld [vmem:[%s2198_s30 + $0x8] sm:$0xf]  ;;  %s187_s27 = scalar_lea.vmem [#allocation2], %s1953_s26 }
  0x1c   : > { %206 = vrot.lane.b32.xlu1 %v2203_v1, %s2106_s4  ;;  %v205_v2 = vcombine.high %v2203_v1, %v2203_v1  ;;  %v518_v4 = vld [vmem:[%s2198_s30 + $0x8] sm:$0xf]  ;;  %s1733_s29 = sshll.u32 %s187_s27, 4  ;;  %s2352_s29 = int_to_ptr.vmem [resolvable:$true] %s1733_s29 }
  0x1d   : > { %v687_v5 = vld [vmem:[%s2198_s30 + $0x8] sm:$0xf]  ;;  %s2024_s15 = scalar_lea.vmem %s2352_s29, 384 }
  0x1e   : > { %208 = vrot.lane.b32.xlu0 %v205_v2, %s2106_s4  ;;  %v856_v6 = vld [vmem:[%s2198_s30 + $0x8] sm:$0xf]  ;;  %p2025_p12 = scmp.ne.s32.totalorder %s2352_s29, %s2024_s15 }
  0x1f   : > { %v1025_v7 = vld [vmem:[%s2198_s30 + $0x8] sm:$0xf] }
  0x20   : > { %526 = vrot.lane.b32.xlu1 %v205_v2, %s2107_s5  ;;  %v1194_v8 = vld [vmem:[%s2198_s30 + $0x8] sm:$0xf]  ;;  %p2026_p13 = pnand %p2025_p12, %p2176_p4 }
  0x21   : > { %v1363_v9 = vld [vmem:[%s2198_s30 + $0x8] sm:$0xf] }
  0x22   : > { %210 = vrot.lane.b32.xlu0 %v2209_v3, %s2106_s4  ;;  %v1532_v10 = vld [vmem:[%s2198_s30 + $0x8] sm:$0xf]  ;;  %p2027_p0 = pneg %p2026_p13 }
  0x24   : > { %524 = vrot.lane.b32.xlu1 %v2203_v1, %s2107_s5 }
  0x26   : > { %528 = vrot.lane.b32.xlu0 %v518_v4, %s2107_s5  ;;  %s2350_s5 = scalar_lea.hbm %s2400_s3, %s1955_s28 }
  0x28   : > { %697 = vrot.lane.b32.xlu1 %v687_v5, %s2108_s6 }
  0x2a   : > { %695 = vrot.lane.b32.xlu0 %v205_v2, %s2108_s6 }
  0x2c   : > { %864 = vrot.lane.b32.xlu1 %v205_v2, %s2109_s7 }
  0x2e   : > { %693 = vrot.lane.b32.xlu0 %v2203_v1, %s2108_s6  ;;  %s1717_s6 = scalar_lea.sflag [#allocation3], %s185_s23 }
  0x30   : > { %862 = vrot.lane.b32.xlu1 %v2203_v1, %s2109_s7 }
  0x32   : > { %866 = vrot.lane.b32.xlu0 %v856_v6, %s2109_s7  ;;  %s2115_s7 = smov [#allocation2]  }
  0x34   : > { %1035 = vrot.lane.b32.xlu1 %v1025_v7, %s2110_s8 }
  0x36   : > { %1033 = vrot.lane.b32.xlu0 %v205_v2, %s2110_s8 }
  0x38   : > { %1202 = vrot.lane.b32.xlu1 %v205_v2, %s2111_s9 }
  0x3a   : > { %1031 = vrot.lane.b32.xlu0 %v2203_v1, %s2110_s8  ;;  %s2028_s8 = sshll.u32 %s2115_s7, 4  ;;  %s2029_s8 = int_to_ptr.vmem [resolvable:$false] %s2028_s8 }
  0x3b   : > { %p2031_p1 = scmp.lt.s32.totalorder %s2352_s29, %s2029_s8 }
  0x3c   : > { %1200 = vrot.lane.b32.xlu1 %v2203_v1, %s2111_s9 }
  0x3e   : > { %1204 = vrot.lane.b32.xlu0 %v1194_v8, %s2111_s9  ;;  %s2030_s9 = scalar_lea.vmem %s2029_s8, 768 }
  0x3f   : > { %p2032_p2 = scmp.lt.s32.totalorder %s2030_s9, %s2024_s15 }
  0x40   : > { %1373 = vrot.lane.b32.xlu1 %v1363_v9, %s2112_s10 }
  0x41   : > { %p2033_p3 = por %p2032_p2, %p2031_p1 }
  0x42   : > { %1371 = vrot.lane.b32.xlu0 %v205_v2, %s2112_s10 }
  0x43   : > { %p2034_p5 = pnand %p2033_p3, %p2027_p0 }
  0x44   : > { %1540 = vrot.lane.b32.xlu1 %v205_v2, %s2113_s11 }
  0x46   : > { %1369 = vrot.lane.b32.xlu0 %v2203_v1, %s2112_s10 }
  0x48   : > { %1538 = vrot.lane.b32.xlu1 %v2203_v1, %s2113_s11 }
  0x4a   : > { %1542 = vrot.lane.b32.xlu0 %v1532_v10, %s2113_s11 }
  0x4e   : > { %1703 = vperm.xlu0 %2022, %v1700_v11  }
  0x8e   : > { %v207_v13 = vpop.permute.xlu1 %206 }
  0x90   : > { %v209_v14 = vpop.permute.xlu0 %208 }
  0x91   : > { %v213_v19 = vsel %vm212_vm2, %v207_v13, %v209_v14 }
  0x92   : > { %v527_v15 = vpop.permute.xlu1 %526 }
  0x94   : > { %v211_v16 = vpop.permute.xlu0 %210 }
  0x95   : > { %1893 = vmatpush3.msk.msra.mxu1 %vm219_vm1, %v211_v16  ;;  %v214_v17 = vsel %vm212_vm2, %v209_v14, %v211_v16 }
  0x96   : > { %1819 = vmatprep.subr.msk.mxu0 %vm219_vm1, %v214_v17  ;;  %v525_v20 = vpop.permute.xlu1 %524  ;;  %1895 = vmatmul.mubr.msk.f32.vlgmr.msra.gmra.mrb[0].mxu1 %vm215_vm3, %v1818_v18 }
  0x97   : > { %1820 = vmatpush1.msk.msra.mxu0 %vm219_vm1, %v213_v19  ;;  %1897 = vmatprep.subr.mxu1 %v2104_v0  ;;  %v531_v26 = vsel %vm530_vm4, %v525_v20, %v527_v15 }
  0x98   : > { %1821 = vmatmul.mubr.msk.f32.vlgmr.msra.gmra.mrb[0].mxu0 %vm215_vm3, %v1818_v18  ;;  %1824 = vmatprep.subr.msk.mxu0 %vm219_vm1, %v205_v2  ;;  %v529_v21 = vpop.permute.xlu0 %528 }
  0x99   : > { %1825 = vmatpush1.msk.msra.mxu0 %vm219_vm1, %v2203_v1  ;;  %v532_v22 = vsel %vm530_vm4, %v527_v15, %v529_v21  ;;  %1898 = vmatpush3.msk.msra.mxu1 %vm219_vm1, %v2209_v3 }
  0x9a   : > { %1830 = vmatprep.subr.msk.mxu0 %vm219_vm1, %v532_v22  ;;  %1899 = vmatprep.mubr.msk.f32.mxu1 %vm2105_vm0, %v2104_v0  ;;  %v698_v23 = vpop.permute.xlu1 %697 }
  0x9b   : > { %1902 = vmatprep.subr.mxu1 %v2104_v0  ;;  %440 = vmatprep.mubr.f32.mxu0 %v2104_v0 }
  0x9c   : > { %1900 = vmatmul.mubr.msk.f32.vlgmr.msra.gmra.mrb[2].mxu1 %vm215_vm3, %v200_v24  ;;  %v696_v25 = vpop.permute.xlu0 %695 }
  0x9d   : > { %1903 = vmatpush3.msk.msra.mxu1 %vm219_vm1, %v529_v21  ;;  %1904 = vmatprep.mubr.msk.f32.mxu1 %vm2105_vm0, %v2104_v0  ;;  %v701_v28 = vsel %vm699_vm5, %v696_v25, %v698_v23 }
  0x9e   : > { %1907 = vmatprep.subr.mxu1 %v2104_v0  ;;  %v865_v27 = vpop.permute.xlu1 %864 }
  0xa0   : > { %1826 = vmatmul.mubr.msk.f32.vlgmr.msra.gmra.mrb[0].mxu0 %vm215_vm3, %v200_v24  ;;  %v694_v30 = vpop.permute.xlu0 %693  ;;  %1905 = vmatmul.mubr.msk.f32.vlgmr.msra.gmra.mrb[4].mxu1 %vm215_vm3, %v1829_v29 }
  0xa1   : > { %1831 = vmatpush1.msk.msra.mxu0 %vm219_vm1, %v531_v26  ;;  %606 = vmatprep.mubr.f32.mxu0 %v2104_v0  ;;  %v700_v35 = vsel %vm699_vm5, %v694_v30, %v696_v25 }
  0xa2   : > { %1836 = vmatprep.subr.msk.mxu0 %vm219_vm1, %v701_v28  ;;  %1908 = vmatpush3.msk.msra.mxu1 %vm219_vm1, %v698_v23  ;;  %v863_v32 = vpop.permute.xlu1 %862 }
  0xa3   : > { %1909 = vmatprep.mubr.msk.f32.mxu1 %vm2105_vm0, %v2104_v0  ;;  %1912 = vmatprep.subr.mxu1 %v2104_v0  ;;  %v869_v42 = vsel %vm868_vm6, %v863_v32, %v865_v27 }
  0xa4   : > { %v867_v33 = vpop.permute.xlu0 %866  ;;  %1910 = vmatmul.mubr.msk.f32.vlgmr.msra.gmra.mrb[6].mxu1 %vm215_vm3, %v1835_v31 }
  0xa5   : > { %1913 = vmatpush3.msk.msra.mxu1 %vm219_vm1, %v867_v33  ;;  %1914 = vmatprep.mubr.msk.f32.mxu1 %vm2105_vm0, %v2104_v0  ;;  %v870_v37 = vsel %vm868_vm6, %v865_v27, %v867_v33 }
  0xa6   : > { %v1036_v36 = vpop.permute.xlu1 %1035  ;;  %1917 = vmatprep.subr.mxu1 %v2104_v0 }
  0xa8   : > { %1832 = vmatmul.mubr.msk.f32.vlgmr.msra.gmra.mrb[0].mxu0 %vm215_vm3, %v1829_v29  ;;  %v1034_v38 = vpop.permute.xlu0 %1033  ;;  %1915 = vmatmul.mubr.msk.f32.vlgmr.msra.gmra.mrb[8].mxu1 %vm215_vm3, %v1841_v34 }
  0xa9   : > { %1837 = vmatpush1.msk.msra.mxu0 %vm219_vm1, %v700_v35  ;;  %775 = vmatprep.mubr.f32.mxu0 %v2104_v0  ;;  %v1039_v44 = vsel %vm1037_vm7, %v1034_v38, %v1036_v36 }
  0xaa   : > { %1842 = vmatprep.subr.msk.mxu0 %vm219_vm1, %v870_v37  ;;  %v1203_v40 = vpop.permute.xlu1 %1202  ;;  %1918 = vmatpush3.msk.msra.mxu1 %vm219_vm1, %v1036_v36 }
  0xab   : > { %1919 = vmatprep.mubr.msk.f32.mxu1 %vm2105_vm0, %v2104_v0  ;;  %1922 = vmatprep.subr.mxu1 %v2104_v0 }
  0xac   : > { %v1032_v41 = vpop.permute.xlu0 %1031  ;;  %1920 = vmatmul.mubr.msk.f32.vlgmr.msra.gmra.mrb[10].mxu1 %vm215_vm3, %v1847_v39 }
  0xad   : > { %1924 = vmatprep.mubr.msk.f32.mxu1 %vm2105_vm0, %v2104_v0  ;;  %v1038_v50 = vsel %vm1037_vm7, %v1032_v41, %v1034_v38 }
  0xae   : > { %v1201_v43 = vpop.permute.xlu1 %1200 }
  0xaf   : > { %v1207_v55 = vsel %vm1206_vm8, %v1201_v43, %v1203_v40 }
  0xb0   : > { %1838 = vmatmul.mubr.msk.f32.vlgmr.msra.gmra.mrb[0].mxu0 %vm215_vm3, %v1835_v31  ;;  %v1205_v45 = vpop.permute.xlu0 %1204 }
  0xb1   : > { %1843 = vmatpush1.msk.msra.mxu0 %vm219_vm1, %v869_v42  ;;  %944 = vmatprep.mubr.f32.mxu0 %v2104_v0  ;;  %v1208_v51 = vsel %vm1206_vm8, %v1203_v40, %v1205_v45 }
  0xb2   : > { %1848 = vmatprep.subr.msk.mxu0 %vm219_vm1, %v1039_v44  ;;  %1923 = vmatpush3.msk.msra.mxu1 %vm219_vm1, %v1205_v45  ;;  %v1374_v47 = vpop.permute.xlu1 %1373 }
  0xb3   : > { %1925 = vmatmul.mubr.msk.f32.vlgmr.msra.gmra.mrb[12].mxu1 %vm215_vm3, %v1853_v46  ;;  %1927 = vmatprep.subr.mxu1 %v2104_v0 }
  0xb4   : > { %v1372_v48 = vpop.permute.xlu0 %1371  ;;  %1928 = vmatpush3.msk.msra.mxu1 %vm219_vm1, %v1374_v47  ;;  %1929 = vmatprep.mubr.msk.f32.mxu1 %vm2105_vm0, %v2104_v0 }
  0xb5   : > { %1932 = vmatprep.subr.mxu1 %v2104_v0  ;;  %v1377_v56 = vsel %vm1375_vm9, %v1372_v48, %v1374_v47 }
  0xb6   : > { %v1541_v57 = vpop.permute.xlu1 %1540 }
  0xb7   : > { %1930 = vmatmul.mubr.msk.f32.vlgmr.msra.gmra.mrb[14].mxu1 %vm215_vm3, %v1859_v49 }
  0xb8   : > { %1844 = vmatmul.mubr.msk.f32.vlgmr.msra.gmra.mrb[0].mxu0 %vm215_vm3, %v1841_v34  ;;  %v1370_v52 = vpop.permute.xlu0 %1369  ;;  %1934 = vmatprep.mubr.msk.f32.mxu1 %vm2105_vm0, %v2104_v0 }
  0xb9   : > { %1849 = vmatpush1.msk.msra.mxu0 %vm219_vm1, %v1038_v50  ;;  %1113 = vmatprep.mubr.f32.mxu0 %v2104_v0  ;;  %v1376_v58 = vsel %vm1375_vm9, %v1370_v52, %v1372_v48 }
  0xba   : > { %1854 = vmatprep.subr.msk.mxu0 %vm219_vm1, %v1208_v51  ;;  %v1539_v60 = vpop.permute.xlu1 %1538 }
  0xbb   : > { %v1545_v61 = vsel %vm1544_vm10, %v1539_v60, %v1541_v57 }
  0xbc   : > { %v1543_v54 = vpop.permute.xlu0 %1542 }
  0xbd   : > { %1933 = vmatpush3.msk.msra.mxu1 %vm219_vm1, %v1543_v54  ;;  %v1546_v59 = vsel %vm1544_vm10, %v1541_v57, %v1543_v54 }
  0xbe   : > { %1935 = vmatmul.mubr.msk.f32.vlgmr.msra.gmra.mrb[16].mxu1 %vm215_vm3, %v1865_v53 }
  0xc0   : > { %1850 = vmatmul.mubr.msk.f32.vlgmr.msra.gmra.mrb[0].mxu0 %vm215_vm3, %v1847_v39 }
  0xc1   : > { %1855 = vmatpush1.msk.msra.mxu0 %vm219_vm1, %v1207_v55  ;;  %1282 = vmatprep.mubr.f32.mxu0 %v2104_v0 }
  0xc2   : > { %1860 = vmatprep.subr.msk.mxu0 %vm219_vm1, %v1377_v56 }
  0xc8   : > { %1856 = vmatmul.mubr.msk.f32.vlgmr.msra.gmra.mrb[0].mxu0 %vm215_vm3, %v1853_v46 }
  0xc9   : > { %1861 = vmatpush1.msk.msra.mxu0 %vm219_vm1, %v1376_v58  ;;  %1451 = vmatprep.mubr.f32.mxu0 %v2104_v0 }
  0xca   : > { %1866 = vmatprep.subr.msk.mxu0 %vm219_vm1, %v1546_v59 }
  0xcd   : > { %v1704_v22 = vpop.permute.xlu0 %1703 }
  0xd0   : > { %1862 = vmatmul.mubr.msk.f32.vlgmr.msra.gmra.mrb[0].mxu0 %vm215_vm3, %v1859_v49 }
  0xd1   : > { %1867 = vmatpush1.msk.msra.mxu0 %vm219_vm1, %v1545_v61  ;;  %1620 = vmatprep.mubr.f32.mxu0 %v2104_v0 }
  0xd8   : > { %1868 = vmatmul.mubr.msk.f32.vlgmr.msra.gmra.mrb[0].mxu0 %vm215_vm3, %v1865_v53 }
 0x169   : > { %v363_v62 = vpop.f32.mrb[0].mxu1 }
 0x16a   : > { %v1896_v63 = vpop.f32.mrb[1].mxu1 }
 0x16f   : > { %v513_v1 = vpop.f32.mrb[2].mxu1 }
 0x170   : > { %v514_v2 = vadd.f32 %v513_v1, %v363_v62  ;;  %v1901_v3 = vpop.f32.mrb[3].mxu1 }
 0x173   : > { %v679_v4 = vpop.f32.mrb[4].mxu1 }
 0x174   : > { %v685_v5 = vadd.f32 %v679_v4, %v514_v2  ;;  %v1906_v6 = vpop.f32.mrb[5].mxu1 }
 0x177   : > { %v848_v7 = vpop.f32.mrb[6].mxu1 }
 0x178   : > { %v854_v8 = vadd.f32 %v848_v7, %v685_v5  ;;  %v1911_v9 = vpop.f32.mrb[7].mxu1 }
 0x17b   : > { %v1017_v10 = vpop.f32.mrb[8].mxu1 }
 0x17c   : > { %v1023_v11 = vadd.f32 %v1017_v10, %v854_v8  ;;  %v1916_v12 = vpop.f32.mrb[9].mxu1 }
 0x17f   : > { %v1186_v13 = vpop.f32.mrb[10].mxu1 }
 0x180   : > { %v1192_v14 = vadd.f32 %v1186_v13, %v1023_v11  ;;  %v1921_v0 = vpop.f32.mrb[11].mxu1 }
 0x186   : > { %v1355_v15 = vpop.f32.mrb[12].mxu1 }
 0x187   : > { %v1361_v16 = vadd.f32 %v1355_v15, %v1192_v14  ;;  %v1926_v17 = vpop.f32.mrb[13].mxu1 }
 0x18a   : > { %v1524_v18 = vpop.f32.mrb[14].mxu1 }
 0x18b   : > { %v1530_v19 = vadd.f32 %v1524_v18, %v1361_v16  ;;  %v1931_v20 = vpop.f32.mrb[15].mxu1 }
 0x191   : > { %v1693_v21 = vpop.f32.mrb[16].mxu1 }
 0x192   : > { %v1699_v23 = vadd.f32 %v1693_v21, %v1530_v19  ;;  %v1936_v24 = vpop.f32.mrb[17].mxu1 }
 0x194   : > { %v1708_v25 = vadd.f32 %v1704_v22, %v1699_v23 }
 0x196   : > { %v1711_v26 = vmax.f32 %v1708_v25, 0.0 }
 0x198   : > { %1715 = vst.msk [vmem:[%s187_s27 + $0x10] sm:$0xff] %vm1714_vm11, %v1711_v26 }
 0x1ab   : > { %v1622_v27 = vpop.f32.mrb[0].mxu0 }
 0x1ac   : > { %v1706_v28 = vadd.f32 %v1704_v22, %v1622_v27  ;;  %v1624_v29 = vpop.f32.mrb[1].mxu0 }
 0x1ad   : > { %v1707_v30 = vadd.f32 %v1704_v22, %v1624_v29 }
 0x1ae   : > { %v1709_v31 = vmax.f32 %v1706_v28, 0.0 }
 0x1af   : > { %v1710_v32 = vmax.f32 %v1707_v30, 0.0 }
 0x1b0   : > { %1712 = vst [vmem:[%s187_s27] sm:$0xff] %v1709_v31 }
 0x1b1   : > { %1713 = vst [vmem:[%s187_s27 + $0x8] sm:$0xff] %v1710_v32 }
 0x1b2   : > { %2037 = shalt.err (!%p2034_p5)
}
 0x1b3   : > { %s2038_s10 = scalar_lea.hbm %s2350_s5, 384  ;;  %s2042_s19 = scalar_lea.hbm %s2400_s3, 768 }
 0x1b4   : > { %p2039_p6 = scmp.ne.s32.totalorder %s2350_s5, %s2038_s10  ;;  %p2043_p10 = scmp.lt.u32.totalorder %s2350_s5, %s2400_s3 }
 0x1b5   : > { %p2044_p11 = scmp.lt.u32.totalorder %s2042_s19, %s2038_s10  ;;  %p2046_p13 = scmp.lt.u32.totalorder %s2038_s10, %s2350_s5 }
 0x1b6   : > { %p2040_p7 = pnand %p2039_p6, %p2176_p4 }
 0x1b7   : > { %p2045_p12 = por %p2044_p11, %p2043_p10 }
 0x1b8   : > { %p2041_p9 = pneg %p2040_p7 }
 0x1b9   : > { %p2047_p0 = por %p2046_p13, %p2045_p12 }
 0x1bb   : > { %p2048_p1 = pnand %p2047_p0, %p2041_p9 }
 0x1bd   : > { %2051 = shalt.err (!%p2048_p1)
}
 0x1be   : > { %1956 = dma.vmem_to_hbm [thread:$0]  (%p2176_p4), %s2352_s29, 384, %s2350_s5, %s1717_s6  }
 0x1bf PF: > { %p1962_p2 = scmp.ge.s32.totalorder %s2102_s17, 2  ;;  %s1745_s26 = sand.u32 1, %s2082_s12  }
 0x1c0   : > { %s1746_s27 = scalar_lea.sflag [#allocation3], %s1745_s26 }
 0x1c1   : > { %p1959_p3 = pnand %p1962_p2, %p2183_p8 }
 0x1c3   : > { %2077 = dma.done.wait (!%p1959_p3), %s1746_s27, 384  }
 0x1c4   : > { %2079 = vsyncadd (!%p1959_p3), %s1746_s27, 4294966912  ;;  %s16_s17 = sadd.s32 1, %s2102_s17   ;;  %s2403_s12 = smov %s2086_s13 }
 0x1c5   : > { %p13_p5 = scmp.ge.s32.totalorder %s16_s17, 4   ;;  %s2404_s13 = smov %s2090_s14 }
 0x1c6   : > { %s2405_s14 = smov %s2189_s25  ;;  %s2406_s15 = smov %s2098_s16 }
 0x1c7   : > { %s2407_s16 = smov %s2409_s20  ;;  %15 = sbr.rel (!%p13_p5) target bundleno = 4 (0x4), region = 75 }
 0x1ce   :  { %1751 = vsyncpa [#allocation3], 1 }
 0x1cf   :  { %1753 = vsyncpa [#allocation3 + $0x1], 1 }

</bundles_post_ra>
